<compile_context>
chip_gen: v6e
topology: v6e:2x2x1
jax: 0.10.0
libtpu: 0.0.40
codegen_flags: <defaults>
</compile_context>

<pallas_src>
import numpy as np
import jax
import jax.numpy as jnp
from jax.experimental import pallas as pl
from jax.experimental.pallas import tpu as pltpu

SAMPLE_RATE = 16000
N_FFT = 400
N_MELS = 64
HOP = N_FFT // 2            # torchaudio default hop_length = n_fft // 2
N_FREQ = N_FFT // 2 + 1     # onesided STFT bins (201)

N_FFT_PAD = 512             # 400 -> 512  (4 lane-vregs)
N_FREQ_PAD = 256            # 201 -> 256  (2 lane-vregs)
MAX_TILE_T = 256            # frame rows per grid step


# ----------------------------- host constants -----------------------------
def _hann_window(n_fft):
    # torch.hann_window(n_fft, periodic=True)
    n = np.arange(n_fft, dtype=np.float64)
    return 0.5 * (1.0 - np.cos(2.0 * np.pi * n / n_fft))


def _fused_windowed_dft(n_fft, n_freq):
    """(N_FFT_PAD, 2*N_FREQ_PAD): [win*cos | -win*sin], zero-padded."""
    n = np.arange(n_fft, dtype=np.float64)[:, None]
    f = np.arange(n_freq, dtype=np.float64)[None, :]
    ang = 2.0 * np.pi * f * n / n_fft
    win = _hann_window(n_fft)[:, None]
    w = np.zeros((N_FFT_PAD, 2 * N_FREQ_PAD), dtype=np.float32)
    w[:n_fft, :n_freq] = win * np.cos(ang)
    w[:n_fft, N_FREQ_PAD:N_FREQ_PAD + n_freq] = -win * np.sin(ang)
    return w


def _melscale_fbanks(n_freqs, f_min, f_max, n_mels, sample_rate):
    # torchaudio.functional.melscale_fbanks with norm=None, mel_scale="htk",
    # K padded to N_FREQ_PAD with zero rows.
    all_freqs = np.linspace(0.0, sample_rate // 2, n_freqs)
    m_min = 2595.0 * np.log10(1.0 + f_min / 700.0)
    m_max = 2595.0 * np.log10(1.0 + f_max / 700.0)
    m_pts = np.linspace(m_min, m_max, n_mels + 2)
    f_pts = 700.0 * (10.0 ** (m_pts / 2595.0) - 1.0)
    f_diff = f_pts[1:] - f_pts[:-1]
    slopes = f_pts[None, :] - all_freqs[:, None]
    down = -slopes[:, :-2] / f_diff[:-1]
    up = slopes[:, 2:] / f_diff[1:]
    fb = np.maximum(0.0, np.minimum(down, up)).astype(np.float32)  # (n_freqs, n_mels)
    fb_pad = np.zeros((N_FREQ_PAD, n_mels), dtype=np.float32)
    fb_pad[:n_freqs] = fb
    return fb_pad


# ------------------------------- kernels -----------------------------------
def _mel_kernel(frames_ref, dft_ref, fb_ref, o_ref):
    # frames (tile_t, 512) bf16, dft (512, 512) bf16, fb (256, 64) f32.
    spec = jnp.dot(frames_ref[...], dft_ref[...],
                   preferred_element_type=jnp.float32)       # (tile_t, 512)
    re = spec[:, :N_FREQ_PAD]                                 # static 2-vreg slice
    im = spec[:, N_FREQ_PAD:]
    power = re * re + im * im                                 # |STFT|^2, power=2.0
    o_ref[...] = jnp.dot(power, fb_ref[...],
                         preferred_element_type=jnp.float32)  # (tile_t, n_mels)


def _normalize_kernel(stats_ref, mel_ref, o_ref):
    # stats (SMEM, f32[2]): [mmin, 1 / (mmax - mmin + eps)]
    o_ref[...] = (mel_ref[...] - stats_ref[0]) * stats_ref[1]


# ------------------------------- wrapper ------------------------------------
@jax.jit
def mel_spec_transform_nodb(waveform):
    """waveform: (1, L) float32 -> normalized mel spectrogram (T, n_mels)."""
    x = waveform.reshape(-1).astype(jnp.float32)              # .squeeze()
    L = x.shape[0]

    # ---- framing glue (center=True reflect pad; no gather op) ----
    xp = jnp.pad(x, (N_FFT // 2, N_FFT // 2), mode="reflect")  # len L + N_FFT
    n_frames = 1 + L // HOP
    n_halves = n_frames + 1
    halves = xp[: n_halves * HOP].reshape(n_halves, HOP)        # (T+1, hop)
    # frame t = [halves[t] | halves[t+1]] since hop == n_fft // 2; pad to 512.
    frames = jnp.concatenate(
        [halves[:-1], halves[1:],
         jnp.zeros((n_frames, N_FFT_PAD - N_FFT), jnp.float32)], axis=1)
    frames = frames.astype(jnp.bfloat16)   # halve HBM bytes, MXU-native operand

    dft = jnp.asarray(_fused_windowed_dft(N_FFT, N_FREQ), dtype=jnp.bfloat16)
    fb = jnp.asarray(_melscale_fbanks(N_FREQ, 0.0, SAMPLE_RATE / 2.0,
                                      N_MELS, SAMPLE_RATE))

    T = n_frames
    tile_t = min(MAX_TILE_T, ((T + 7) // 8) * 8)
    grid = (pl.cdiv(T, tile_t),)
    cparams = pltpu.CompilerParams(
        dimension_semantics=("parallel",),
        vmem_limit_bytes=32 * 1024 * 1024)

    # ---- pass 1: window(folded) + DFT + power + mel, tiled over time ----
    mel = pl.pallas_call(
        _mel_kernel,
        out_shape=jax.ShapeDtypeStruct((T, N_MELS), jnp.float32),
        grid=grid,
        in_specs=[pl.BlockSpec((tile_t, N_FFT_PAD), lambda i: (i, 0)),
                  pl.BlockSpec((N_FFT_PAD, 2 * N_FREQ_PAD), lambda i: (0, 0)),
                  pl.BlockSpec((N_FREQ_PAD, N_MELS), lambda i: (0, 0))],
        out_specs=pl.BlockSpec((tile_t, N_MELS), lambda i: (i, 0)),
        compiler_params=cparams,
    )(frames, dft, fb)

    # ---- pass 2: global min-max normalization (tiny, mem-bound) ----
    # TODO(synk): the PyTorch module takes a user-supplied `normalizer`
    # callable; a deterministic global min-max normalizer is assumed here.
    mmin = jnp.min(mel)
    mmax = jnp.max(mel)
    stats = jnp.stack([mmin, 1.0 / (mmax - mmin + 1e-10)]).astype(jnp.float32)

    out = pl.pallas_call(
        _normalize_kernel,
        out_shape=jax.ShapeDtypeStruct((T, N_MELS), jnp.float32),
        grid=grid,
        in_specs=[pl.BlockSpec(memory_space=pltpu.MemorySpace.SMEM),
                  pl.BlockSpec((tile_t, N_MELS), lambda i: (i, 0))],
        out_specs=pl.BlockSpec((tile_t, N_MELS), lambda i: (i, 0)),
        compiler_params=cparams,
    )(stats, mel)
    return out


if __name__ == "__main__":
    key = jax.random.PRNGKey(0)
    # 0.1 s of audio at 16 kHz, shaped like a torchaudio waveform (channels, time)
    waveform = jax.random.normal(key, (1, 1600), dtype=jnp.float32)
    out = mel_spec_transform_nodb(waveform)
    out = jax.block_until_ready(out)
    assert out.shape == (1 + 1600 // HOP, N_MELS)
    assert out.dtype == jnp.float32
    assert bool(jnp.all(jnp.isfinite(out)))
    print("KERNEL_OK")
</pallas_src>

<mosaic_0001>
module attributes {stable_mosaic.version = 11 : i64} {
  func.func @_mel_kernel(%arg0: i32, %arg1: memref<16x512xbf16, #tpu.memory_space<vmem>>, %arg2: memref<512x512xbf16, #tpu.memory_space<vmem>>, %arg3: memref<256x64xf32, #tpu.memory_space<vmem>>, %arg4: memref<16x64xf32, #tpu.memory_space<vmem>>) attributes {dimension_semantics = [#tpu.dimension_semantics<parallel>], iteration_bounds = array<i64: 1>, scalar_prefetch = 0 : i64, scratch_operands = 0 : i64, tpu.core_type = #tpu.core_type<tc>, window_params = [{transform_indices = @transform_0, window_bounds = array<i64: 16, 512>}, {pipeline_mode = #tpu.pipeline_mode<synchronous>, transform_indices = @transform_1, window_bounds = array<i64: 512, 512>}, {pipeline_mode = #tpu.pipeline_mode<synchronous>, transform_indices = @transform_2, window_bounds = array<i64: 256, 64>}, {transform_indices = @transform_3, window_bounds = array<i64: 16, 64>}]} {
    %c0 = arith.constant 0 : index
    %c0_0 = arith.constant 0 : index
    %0 = vector.load %arg1[%c0, %c0_0] : memref<16x512xbf16, #tpu.memory_space<vmem>>, vector<16x512xbf16>
    %c0_1 = arith.constant 0 : index
    %c0_2 = arith.constant 0 : index
    %1 = vector.load %arg2[%c0_1, %c0_2] : memref<512x512xbf16, #tpu.memory_space<vmem>>, vector<512x512xbf16>
    %cst = arith.constant dense<0.000000e+00> : vector<16x512xf32>
    %2 = tpu.matmul %0, %1, %cst {dimension_numbers = #tpu.dot_dimension_numbers<[1], [0], [0], [1], [0, 0, 1, 1], [], []>} : vector<16x512xbf16>, vector<512x512xbf16>, vector<16x512xf32> -> vector<16x512xf32>
    %3 = vector.extract_strided_slice %2 {offsets = [0, 0], sizes = [16, 256], strides = [1, 1]} : vector<16x512xf32> to vector<16x256xf32>
    %4 = vector.extract_strided_slice %2 {offsets = [0, 256], sizes = [16, 256], strides = [1, 1]} : vector<16x512xf32> to vector<16x256xf32>
    %5 = arith.mulf %3, %3 : vector<16x256xf32>
    %6 = arith.mulf %4, %4 : vector<16x256xf32>
    %7 = arith.addf %5, %6 : vector<16x256xf32>
    %c0_3 = arith.constant 0 : index
    %c0_4 = arith.constant 0 : index
    %8 = vector.load %arg3[%c0_3, %c0_4] : memref<256x64xf32, #tpu.memory_space<vmem>>, vector<256x64xf32>
    %cst_5 = arith.constant dense<0.000000e+00> : vector<16x64xf32>
    %9 = tpu.matmul %7, %8, %cst_5 {dimension_numbers = #tpu.dot_dimension_numbers<[1], [0], [0], [1], [0, 0, 1, 1], [], []>} : vector<16x256xf32>, vector<256x64xf32>, vector<16x64xf32> -> vector<16x64xf32>
    %c0_6 = arith.constant 0 : index
    %c0_7 = arith.constant 0 : index
    %10 = vector.load %arg4[%c0_6, %c0_7] : memref<16x64xf32, #tpu.memory_space<vmem>>, vector<16x64xf32>
    tpu.vector_store %arg4[%c0_6, %c0_7], %9 {strides = array<i32>} : memref<16x64xf32, #tpu.memory_space<vmem>>, vector<16x64xf32>,
    return
  }
  func.func @transform_0(%arg0: i32) -> (i32, i32) {
    %c0_i32 = arith.constant 0 : i32
    %c0_i32_0 = arith.constant 0 : i32
    return %arg0, %c0_i32 : i32, i32
  }
  func.func @transform_1(%arg0: i32) -> (i32, i32) {
    %c0_i32 = arith.constant 0 : i32
    %c0_i32_0 = arith.constant 0 : i32
    %c0_i32_1 = arith.constant 0 : i32
    return %c0_i32, %c0_i32_0 : i32, i32
  }
  func.func @transform_2(%arg0: i32) -> (i32, i32) {
    %c0_i32 = arith.constant 0 : i32
    %c0_i32_0 = arith.constant 0 : i32
    %c0_i32_1 = arith.constant 0 : i32
    return %c0_i32, %c0_i32_0 : i32, i32
  }
  func.func @transform_3(%arg0: i32) -> (i32, i32) {
    %c0_i32 = arith.constant 0 : i32
    %c0_i32_0 = arith.constant 0 : i32
    return %arg0, %c0_i32 : i32, i32
  }
}

module attributes {stable_mosaic.version = 11 : i64} {
  func.func @_normalize_kernel(%arg0: i32, %arg1: memref<2xf32, #tpu.memory_space<smem>>, %arg2: memref<16x64xf32, #tpu.memory_space<vmem>>, %arg3: memref<16x64xf32, #tpu.memory_space<vmem>>) attributes {dimension_semantics = [#tpu.dimension_semantics<parallel>], iteration_bounds = array<i64: 1>, scalar_prefetch = 0 : i64, scratch_operands = 0 : i64, tpu.core_type = #tpu.core_type<tc>, window_params = [{transform_indices = @transform_0, window_bounds = array<i64: 2>}, {transform_indices = @transform_1, window_bounds = array<i64: 16, 64>}, {transform_indices = @transform_2, window_bounds = array<i64: 16, 64>}]} {
    %c0 = arith.constant 0 : index
    %c0_0 = arith.constant 0 : index
    %0 = vector.load %arg2[%c0, %c0_0] : memref<16x64xf32, #tpu.memory_space<vmem>>, vector<16x64xf32>
    %c0_1 = arith.constant 0 : index
    %1 = memref.load %arg1[%c0_1] : memref<2xf32, #tpu.memory_space<smem>>
    %2 = vector.broadcast %1 : f32 to vector<16x64xf32>
    %3 = arith.subf %0, %2 : vector<16x64xf32>
    %c1 = arith.constant 1 : index
    %4 = memref.load %arg1[%c1] : memref<2xf32, #tpu.memory_space<smem>>
    %5 = vector.broadcast %4 : f32 to vector<16x64xf32>
    %6 = arith.mulf %3, %5 : vector<16x64xf32>
    %c0_2 = arith.constant 0 : index
    %c0_3 = arith.constant 0 : index
    %7 = vector.load %arg3[%c0_2, %c0_3] : memref<16x64xf32, #tpu.memory_space<vmem>>, vector<16x64xf32>
    tpu.vector_store %arg3[%c0_2, %c0_3], %6 {strides = array<i32>} : memref<16x64xf32, #tpu.memory_space<vmem>>, vector<16x64xf32>,
    return
  }
  func.func @transform_0(%arg0: i32) -> i32 {
    %c0_i32 = arith.constant 0 : i32
    %c0_i32_0 = arith.constant 0 : i32
    return %c0_i32 : i32
  }
  func.func @transform_1(%arg0: i32) -> (i32, i32) {
    %c0_i32 = arith.constant 0 : i32
    %c0_i32_0 = arith.constant 0 : i32
    return %arg0, %c0_i32 : i32, i32
  }
  func.func @transform_2(%arg0: i32) -> (i32, i32) {
    %c0_i32 = arith.constant 0 : i32
    %c0_i32_0 = arith.constant 0 : i32
    return %arg0, %c0_i32 : i32, i32
  }
}

</mosaic_0001>

<bundles_post_ra>
// kernel: reverse.1
= control target key start
LH: loop header
LB: loop body
LE: loop exit
PB: predicated region body
PF: predicated region fallthrough
CT: control target
= control target key end

     0   :  { %v2_v0 = vlaneseq  ;;  %s157_s0 = inlined_call_operand.vmem [shape: bf16[256], index: 0, kind: input, shape index: {}]   ;;  %s158_s1 = inlined_call_operand.vmem [shape: bf16[256], index: 1, kind: output, shape index: {}]  }
   0x2   :  { %v3_v1 = vsub.s32 127, %v2_v0 }
   0x4   :  { %4 = vset.pattern.permute.xlu0 %v3_v1 }
   0x5   :  { %v67_v2 = vld [vmem:[#allocation1] sm:$0x1]  ;;  %v22_v3 = vld [vmem:[%s157_s0] sm:$0x1]  ;;  %v84_v12 = vshrl.u32 %v2_v0, 7  ;;  %v140_v15 = vmov 0.0  }
   0x6   :  { %v68_v4 = vunpack.c.l.bf16 %v67_v2  ;;  %23 = vst [vmem:[#allocation1 + $0x1] sm:$0x1] %v22_v3 }
   0x7   :  { %vm85_vm0 = vcmp.lt.s32.totalorder %v84_v12, 2 }
   0x8   :  { %70 = vst [vmem:[#allocation0] sm:$0x3] %v68_v4 }
   0xd   :  { %v53_v5 = vld [vmem:[#allocation1 + $0x1] sm:$0x1] }
   0xe   :  { %v54_v6 = vunpack.c.l.bf16 %v53_v5 }
   0xf   :  { %v72_v7 = vld [vmem:[#allocation0 + $0x7] ss:$-1 sm:$0xff] }
  0x10   :  { %v73_v8 = vrot.slane %v72_v7, 6  ;;  %57 = vst [vmem:[#allocation0 + $0x8] sm:$0x3] %v54_v6 }
  0x12   :  { %74 = vperm.xlu0 %4, %v73_v8  }
  0x17   :  { %v79_v9 = vld [vmem:[#allocation0 + $0xf] ss:$-1 sm:$0xff] }
  0x18   :  { %v80_v10 = vrot.slane %v79_v9, 6 }
  0x1a   :  { %81 = vperm.xlu0 %4, %v80_v10  }
  0x8d   :  { %v75_v11 = vpop.permute.xlu0 %74 }
  0x8e   :  { %76 = vst [vmem:[#allocation2] sm:$0xff] %v75_v11 }
  0x95   :  { %v82_v13 = vpop.permute.xlu0 %81 }
  0x96   :  { %86 = vst.msk [vmem:[#allocation2] sm:$0xff] %vm85_vm0, %v82_v13 }
  0x9d   :  { %v92_v14 = vld [vmem:[#allocation2] sm:$0x3] }
  0x9e   :  { %v93_v16 = vpack.c.bf16 %v140_v15, %v92_v14 }
  0xa0   :  { %96 = vst [vmem:[#allocation3] sm:$0x1] %v93_v16 }
  0xa7   :  { %v113_v17 = vld [vmem:[#allocation3] sm:$0x1] }
  0xa8   :  { %114 = vst [vmem:[%s158_s1] sm:$0x1] %v113_v17 }

// kernel: mel_spec_transform_nodb.3
= control target key start
LH: loop header
LB: loop body
LE: loop exit
PB: predicated region body
PF: predicated region fallthrough
CT: control target
= control target key end

     0   :  { %7 = vsyncpa [#allocation4], 0  ;;  %s127_s0 = inlined_call_operand.vmem [shape: f32[2], index: 0, kind: input, shape index: {}]   ;;  %s128_s1 = inlined_call_operand.vmem [shape: f32[9,64], index: 1, kind: input, shape index: {}]   ;;  %s129_s2 = inlined_call_operand.hbm [shape: f32[9,64], index: 2, kind: output, shape index: {}]  }
   0x1   :  { %8 = vsyncpa [#allocation3], 0  ;;  %s15_s11 = sshll.u32 %s127_s0, 4  ;;  %s16_s11 = int_to_ptr.vmem [resolvable:$true] %s15_s11 }
   0x2   :  { %s60_s12 = scalar_lea.vmem %s16_s11, 16  ;;  %p65_p1 = scmp.lt.s32.totalorder %s16_s11, %s16_s11 }
   0x3   :  { %p61_p0 = scmp.ne.s32.totalorder %s16_s11, %s60_s12  ;;  %p66_p2 = scmp.lt.s32.totalorder %s60_s12, %s60_s12 }
   0x5   :  { %p67_p3 = por %p66_p2, %p65_p1 }
   0x7   :  { %p68_p4 = pnand %p67_p3, %p61_p0 }
   0x9   :  { %71 = shalt.err (!%p68_p4)
}
   0xa   :  { %s96_s13 = smov [#allocation2]  }
   0xb   :  { %18 = dma.vmem_to_smem %s16_s11, 16, %s96_s13, [#allocation4]  }
   0xc   :  { %92 = dma.done.wait [#allocation4], 16  }
   0xd   :  { %93 = vsyncadd [#allocation4], 4294967280 }
   0xe   :  { %24 = sfence }
   0xf   :  { %s27_s14 = sld [smem:[#allocation2]]  ;;  %v25_v0 = vld [vmem:[%s128_s1] sm:$0xff]  ;;  %v26_v1 = vld [vmem:[%s128_s1 + $0x8] sm:$0xff]  ;;  %s97_s19 = smov [#allocation5]   ;;  %vm35_vm0 = vcmask 523264  }
  0x10   :  { %s55_s15 = sld [smem:[#allocation2 + $0x1]]  ;;  %s43_s20 = sshll.u32 %s97_s19, 4  ;;  %s44_s20 = int_to_ptr.vmem [resolvable:$true] %s43_s20 }
  0x11   :  { %s72_s21 = scalar_lea.vmem %s44_s20, 256  ;;  %p77_p6 = scmp.lt.s32.totalorder %s44_s20, %s44_s20 }
  0x12   :  { %p73_p5 = scmp.ne.s32.totalorder %s44_s20, %s72_s21  ;;  %p78_p7 = scmp.lt.s32.totalorder %s72_s21, %s72_s21 }
  0x14   :  { %p79_p8 = por %p78_p7, %p77_p6 }
  0x15   :  { %v28_v2 = vstv %s27_s14 }
  0x16   :  { %v29_v3 = vsub.f32 %v25_v0, %v28_v2  ;;  %v32_v4 = vstv %s55_s15  ;;  %v30_v5 = vsub.f32 %v26_v1, %v28_v2  ;;  %p80_p9 = pnand %p79_p8, %p73_p5 }
  0x18   :  { %v33_v6 = vmul.f32 %v32_v4, %v29_v3  ;;  %v34_v7 = vmul.f32 %v32_v4, %v30_v5 }
  0x1a   :  { %36 = vst.msk [vmem:[#allocation5] sm:$0xff] %vm35_vm0, %v33_v6  ;;  %37 = vst.msk [vmem:[#allocation5 + $0x8] sm:$0xff] %vm35_vm0, %v34_v7 }
  0x1b   :  { %83 = shalt.err (!%p80_p9)
}
  0x1c   :  { %s98_s1 = smov 128   ;;  %s99_s22 = smov 8  }
  0x1d   :  { %49 = dma.vmem_to_hbm [thread:$0]  %s44_s20, 256, %s129_s2, [#allocation3], %s98_s1, %s98_s1, %s99_s22  }
  0x1e   :  { %94 = dma.done.wait [#allocation3], 256  }
  0x1f   :  { %95 = vsyncadd [#allocation3], 4294967040 }
  0x20   :  { %53 = vsyncpa [#allocation3], 1 }
  0x21   :  { %54 = vsyncpa [#allocation4], 1 }

// kernel: mel_spec_transform_nodb.2
= control target key start
LH: loop header
LB: loop body
LE: loop exit
PB: predicated region body
PF: predicated region fallthrough
CT: control target
= control target key end

     0   :  { %8 = vsyncpa [#allocation3], 0  ;;  %s1642_s0 = inlined_call_operand.vmem [shape: bf16[9,512], index: 0, kind: input, shape index: {}]   ;;  %s1643_s1 = inlined_call_operand.hbm [shape: bf16[512,512], index: 1, kind: input, shape index: {}]   ;;  %s1644_s2 = inlined_call_operand.hbm [shape: f32[256,64], index: 2, kind: input, shape index: {}]   ;;  %s1645_s3 = inlined_call_operand.vmem [shape: f32[9,64], index: 3, kind: output, shape index: {}]  }
   0x1   :  { %9 = vsyncpa [#allocation5], 0  ;;  %s1584_s12 = smov [#allocation2]  }
   0x2   :  { %s17_s13 = sshll.u32 %s1584_s12, 4  ;;  %s18_s13 = int_to_ptr.vmem [resolvable:$true] %s17_s13 }
   0x3   :  { %s1548_s14 = scalar_lea.vmem %s18_s13, 16384  ;;  %p1553_p1 = scmp.lt.s32.totalorder %s18_s13, %s18_s13 }
   0x4   :  { %p1549_p0 = scmp.ne.s32.totalorder %s18_s13, %s1548_s14  ;;  %p1554_p2 = scmp.lt.s32.totalorder %s1548_s14, %s1548_s14 }
   0x6   :  { %p1555_p3 = por %p1554_p2, %p1553_p1 }
   0x8   :  { %p1556_p4 = pnand %p1555_p3, %p1549_p0 }
   0xa   :  { %1559 = shalt.err (!%p1556_p4)
}
   0xb   :  { %s1585_s15 = smov 256   ;;  %s1586_s16 = smov 16  }
   0xc   :  { %23 = dma.hbm_to_vmem [thread:$0]  %s1643_s1, 16384, %s18_s13, [#allocation3], %s1585_s15, %s1585_s15, %s1586_s16  }
   0xd   :  { %s1587_s19 = smov [#allocation4]  }
   0xe   :  { %s29_s20 = sshll.u32 %s1587_s19, 4  ;;  %s30_s20 = int_to_ptr.vmem [resolvable:$true] %s29_s20 }
   0xf   :  { %s1568_s21 = scalar_lea.vmem %s30_s20, 4096  ;;  %p1573_p6 = scmp.lt.s32.totalorder %s30_s20, %s30_s20 }
  0x10   :  { %p1569_p5 = scmp.ne.s32.totalorder %s30_s20, %s1568_s21  ;;  %p1574_p7 = scmp.lt.s32.totalorder %s1568_s21, %s1568_s21 }
  0x12   :  { %p1575_p8 = por %p1574_p7, %p1573_p6 }
  0x14   :  { %p1576_p9 = pnand %p1575_p8, %p1569_p5 }
  0x16   :  { %1579 = shalt.err (!%p1576_p9)
}
  0x17   :  { %s1588_s22 = smov 128   ;;  %s1589_s23 = smov 8  }
  0x18   :  { %35 = dma.hbm_to_vmem [thread:$0]  %s1644_s2, 4096, %s30_s20, [#allocation5], %s1588_s22, %s1588_s22, %s1589_s23  }
  0x19   :  { %1580 = dma.done.wait [#allocation3], 16384  }
  0x1a   :  { %1581 = vsyncadd [#allocation3], 4294950912 }
  0x1b   :  { %1582 = dma.done.wait [#allocation5], 4096  }
  0x1c   :  { %1583 = vsyncadd [#allocation5], 4294963200  ;;  %v1342_v0 = vld [vmem:[#allocation2 + $0xe4] ss:$16 sps:$4 sm:$0xff]   ;;  %v1346_v2 = vld [vmem:[#allocation2 + $0xe0] ss:$16 sps:$4 sm:$0xff]  }
  0x1d   :  { %v1344_v1 = vld [vmem:[#allocation2 + $0x2e4] ss:$16 sps:$4 sm:$0xff]   ;;  %834 = vmatprep.subr.bf16.mxu0 %v1342_v0  ;;  %v1347_v3 = vld [vmem:[#allocation2 + $0x2e0] ss:$16 sps:$4 sm:$0xff]   ;;  %v1443_v51 = vld [vmem:[%s1642_s0 + $0xc] ss:$16 sps:$4 sm:$0xff]  }
  0x1e   :  { %877 = vmatprep.subr.bf16.mxu1 %v1344_v1  ;;  %v1348_v4 = vld [vmem:[#allocation2 + $0xc4] ss:$16 sps:$4 sm:$0xff]   ;;  %835 = vmatpush1.bf16.msra.mxu0 %v1346_v2  ;;  %v1352_v6 = vld [vmem:[#allocation2 + $0xc0] ss:$16 sps:$4 sm:$0xff]   ;;  %v1446_v2 = vld [vmem:[#allocation2 + $0xec] ss:$16 sps:$4 sm:$0xff]  }
  0x1f   :  { %878 = vmatpush1.bf16.msra.mxu1 %v1347_v3  ;;  %v1350_v5 = vld [vmem:[#allocation2 + $0x2c4] ss:$16 sps:$4 sm:$0xff]   ;;  %836 = vmatprep.subr.bf16.mxu0 %v1348_v4  ;;  %v1353_v7 = vld [vmem:[#allocation2 + $0x2c0] ss:$16 sps:$4 sm:$0xff]   ;;  %v1449_v3 = vld [vmem:[#allocation2 + $0x2ec] ss:$16 sps:$4 sm:$0xff]  }
  0x20   :  { %879 = vmatprep.subr.bf16.mxu1 %v1350_v5  ;;  %v1354_v8 = vld [vmem:[#allocation2 + $0xa4] ss:$16 sps:$4 sm:$0xff]   ;;  %v1358_v10 = vld [vmem:[#allocation2 + $0xa0] ss:$16 sps:$4 sm:$0xff]   ;;  %909 = vmatprep.mubr.bf16.mxu1 %v1443_v51  ;;  %v1630_v5 = vld [vmem:[%s1642_s0 + $0x8] ss:$16 sps:$4 sm:$0xff]  }
  0x21   :  { %v1356_v9 = vld [vmem:[#allocation2 + $0x2a4] ss:$16 sps:$4 sm:$0xff]   ;;  %v1359_v11 = vld [vmem:[#allocation2 + $0x2a0] ss:$16 sps:$4 sm:$0xff]   ;;  %vm1125_vm0 = vcmask 523264  }
  0x22   :  { %837 = vmatpush1.bf16.msra.mxu0 %v1352_v6  ;;  %v1360_v12 = vld [vmem:[#allocation2 + $0x84] ss:$16 sps:$4 sm:$0xff]   ;;  %v1364_v14 = vld [vmem:[#allocation2 + $0x80] ss:$16 sps:$4 sm:$0xff]   ;;  %v1444_v6 = vld [vmem:[#allocation2 + $0xe8] ss:$16 sps:$4 sm:$0xff]  }
  0x23   :  { %880 = vmatpush1.bf16.msra.mxu1 %v1353_v7  ;;  %838 = vmatprep.subr.bf16.mxu0 %v1354_v8  ;;  %v1362_v13 = vld [vmem:[#allocation2 + $0x284] ss:$16 sps:$4 sm:$0xff]   ;;  %v1365_v15 = vld [vmem:[#allocation2 + $0x280] ss:$16 sps:$4 sm:$0xff]   ;;  %v1447_v7 = vld [vmem:[#allocation2 + $0x2e8] ss:$16 sps:$4 sm:$0xff]  }
  0x24   :  { %881 = vmatprep.subr.bf16.mxu1 %v1356_v9  ;;  %v1366_v16 = vld [vmem:[#allocation2 + $0x64] ss:$16 sps:$4 sm:$0xff]   ;;  %v1370_v18 = vld [vmem:[#allocation2 + $0x60] ss:$16 sps:$4 sm:$0xff]   ;;  %v1452_v8 = vld [vmem:[#allocation2 + $0xcc] ss:$16 sps:$4 sm:$0xff]  }
  0x25   :  { %v1368_v17 = vld [vmem:[#allocation2 + $0x264] ss:$16 sps:$4 sm:$0xff]   ;;  %v1371_v19 = vld [vmem:[#allocation2 + $0x260] ss:$16 sps:$4 sm:$0xff]   ;;  %v1455_v9 = vld [vmem:[#allocation2 + $0x2cc] ss:$16 sps:$4 sm:$0xff]  }
  0x26   :  { %839 = vmatpush1.bf16.msra.mxu0 %v1358_v10  ;;  %v1372_v20 = vld [vmem:[#allocation2 + $0x44] ss:$16 sps:$4 sm:$0xff]   ;;  %v1376_v22 = vld [vmem:[#allocation2 + $0x40] ss:$16 sps:$4 sm:$0xff]   ;;  %v1450_v10 = vld [vmem:[#allocation2 + $0xc8] ss:$16 sps:$4 sm:$0xff]  }
  0x27   :  { %882 = vmatpush1.bf16.msra.mxu1 %v1359_v11  ;;  %840 = vmatprep.subr.bf16.mxu0 %v1360_v12  ;;  %v1374_v21 = vld [vmem:[#allocation2 + $0x244] ss:$16 sps:$4 sm:$0xff]   ;;  %v1377_v23 = vld [vmem:[#allocation2 + $0x240] ss:$16 sps:$4 sm:$0xff]   ;;  %v1453_v11 = vld [vmem:[#allocation2 + $0x2c8] ss:$16 sps:$4 sm:$0xff]  }
  0x28   :  { %883 = vmatprep.subr.bf16.mxu1 %v1362_v13  ;;  %v1378_v24 = vld [vmem:[#allocation2 + $0x24] ss:$16 sps:$4 sm:$0xff]   ;;  %v1382_v26 = vld [vmem:[#allocation2 + $0x20] ss:$16 sps:$4 sm:$0xff]   ;;  %v1458_v12 = vld [vmem:[#allocation2 + $0xac] ss:$16 sps:$4 sm:$0xff]  }
  0x29   :  { %v1380_v25 = vld [vmem:[#allocation2 + $0x224] ss:$16 sps:$4 sm:$0xff]   ;;  %v1383_v27 = vld [vmem:[#allocation2 + $0x220] ss:$16 sps:$4 sm:$0xff]   ;;  %v1461_v13 = vld [vmem:[#allocation2 + $0x2ac] ss:$16 sps:$4 sm:$0xff]  }
  0x2a   :  { %841 = vmatpush1.bf16.msra.mxu0 %v1364_v14  ;;  %v1384_v28 = vld [vmem:[#allocation2 + $0x4] ss:$16 sps:$4 sm:$0xff]   ;;  %v1388_v30 = vld [vmem:[#allocation2] ss:$16 sps:$4 sm:$0xff]   ;;  %v1456_v14 = vld [vmem:[#allocation2 + $0xa8] ss:$16 sps:$4 sm:$0xff]  }
  0x2b   :  { %884 = vmatpush1.bf16.msra.mxu1 %v1365_v15  ;;  %842 = vmatprep.subr.bf16.mxu0 %v1366_v16  ;;  %v1386_v29 = vld [vmem:[#allocation2 + $0x204] ss:$16 sps:$4 sm:$0xff]   ;;  %v1389_v31 = vld [vmem:[#allocation2 + $0x200] ss:$16 sps:$4 sm:$0xff]   ;;  %v1459_v15 = vld [vmem:[#allocation2 + $0x2a8] ss:$16 sps:$4 sm:$0xff]  }
  0x2c   :  { %885 = vmatprep.subr.bf16.mxu1 %v1368_v17  ;;  %v1390_v32 = vld [vmem:[#allocation2 + $0x1e4] ss:$16 sps:$4 sm:$0xff]   ;;  %v1394_v34 = vld [vmem:[#allocation2 + $0x1e0] ss:$16 sps:$4 sm:$0xff]   ;;  %v1464_v16 = vld [vmem:[#allocation2 + $0x8c] ss:$16 sps:$4 sm:$0xff]  }
  0x2d   :  { %v1392_v33 = vld [vmem:[#allocation2 + $0x3e4] ss:$16 sps:$4 sm:$0xff]   ;;  %v1395_v35 = vld [vmem:[#allocation2 + $0x3e0] ss:$16 sps:$4 sm:$0xff]   ;;  %v1467_v17 = vld [vmem:[#allocation2 + $0x28c] ss:$16 sps:$4 sm:$0xff]  }
  0x2e   :  { %843 = vmatpush1.bf16.msra.mxu0 %v1370_v18  ;;  %v1396_v36 = vld [vmem:[#allocation2 + $0x1c4] ss:$16 sps:$4 sm:$0xff]   ;;  %v1400_v38 = vld [vmem:[#allocation2 + $0x1c0] ss:$16 sps:$4 sm:$0xff]   ;;  %v1462_v18 = vld [vmem:[#allocation2 + $0x88] ss:$16 sps:$4 sm:$0xff]  }
  0x2f   :  { %886 = vmatpush1.bf16.msra.mxu1 %v1371_v19  ;;  %844 = vmatprep.subr.bf16.mxu0 %v1372_v20  ;;  %v1398_v37 = vld [vmem:[#allocation2 + $0x3c4] ss:$16 sps:$4 sm:$0xff]   ;;  %v1401_v39 = vld [vmem:[#allocation2 + $0x3c0] ss:$16 sps:$4 sm:$0xff]   ;;  %v1465_v19 = vld [vmem:[#allocation2 + $0x288] ss:$16 sps:$4 sm:$0xff]  }
  0x30   :  { %887 = vmatprep.subr.bf16.mxu1 %v1374_v21  ;;  %v1402_v40 = vld [vmem:[#allocation2 + $0x1a4] ss:$16 sps:$4 sm:$0xff]   ;;  %v1406_v42 = vld [vmem:[#allocation2 + $0x1a0] ss:$16 sps:$4 sm:$0xff]   ;;  %v1470_v20 = vld [vmem:[#allocation2 + $0x6c] ss:$16 sps:$4 sm:$0xff]  }
  0x31   :  { %v1404_v41 = vld [vmem:[#allocation2 + $0x3a4] ss:$16 sps:$4 sm:$0xff]   ;;  %v1407_v43 = vld [vmem:[#allocation2 + $0x3a0] ss:$16 sps:$4 sm:$0xff]   ;;  %v1473_v21 = vld [vmem:[#allocation2 + $0x26c] ss:$16 sps:$4 sm:$0xff]  }
  0x32   :  { %845 = vmatpush1.bf16.msra.mxu0 %v1376_v22  ;;  %v1408_v44 = vld [vmem:[#allocation2 + $0x184] ss:$16 sps:$4 sm:$0xff]   ;;  %v1412_v46 = vld [vmem:[#allocation2 + $0x180] ss:$16 sps:$4 sm:$0xff]   ;;  %v1468_v22 = vld [vmem:[#allocation2 + $0x68] ss:$16 sps:$4 sm:$0xff]  }
  0x33   :  { %888 = vmatpush1.bf16.msra.mxu1 %v1377_v23  ;;  %846 = vmatprep.subr.bf16.mxu0 %v1378_v24  ;;  %v1410_v45 = vld [vmem:[#allocation2 + $0x384] ss:$16 sps:$4 sm:$0xff]   ;;  %v1413_v47 = vld [vmem:[#allocation2 + $0x380] ss:$16 sps:$4 sm:$0xff]   ;;  %v1471_v23 = vld [vmem:[#allocation2 + $0x268] ss:$16 sps:$4 sm:$0xff]  }
  0x34   :  { %889 = vmatprep.subr.bf16.mxu1 %v1380_v25  ;;  %v1414_v48 = vld [vmem:[#allocation2 + $0x164] ss:$16 sps:$4 sm:$0xff]   ;;  %v1418_v52 = vld [vmem:[#allocation2 + $0x160] ss:$16 sps:$4 sm:$0xff]   ;;  %v1476_v24 = vld [vmem:[#allocation2 + $0x4c] ss:$16 sps:$4 sm:$0xff]  }
  0x35   :  { %v1440_v49 = vld [vmem:[%s1642_s0 + $0x4] ss:$16 sps:$4 sm:$0xff]   ;;  %v1419_v53 = vld [vmem:[#allocation2 + $0x360] ss:$16 sps:$4 sm:$0xff]   ;;  %v1479_v25 = vld [vmem:[#allocation2 + $0x24c] ss:$16 sps:$4 sm:$0xff]  }
  0x36   :  { %847 = vmatpush1.bf16.msra.mxu0 %v1382_v26  ;;  %v1416_v50 = vld [vmem:[#allocation2 + $0x364] ss:$16 sps:$4 sm:$0xff]   ;;  %866 = vmatprep.mubr.bf16.mxu0 %v1440_v49  ;;  %v1424_v56 = vld [vmem:[#allocation2 + $0x140] ss:$16 sps:$4 sm:$0xff]   ;;  %v1474_v26 = vld [vmem:[#allocation2 + $0x48] ss:$16 sps:$4 sm:$0xff]  }
  0x37   :  { %890 = vmatpush1.bf16.msra.mxu1 %v1383_v27  ;;  %848 = vmatprep.subr.bf16.mxu0 %v1384_v28  ;;  %v1420_v54 = vld [vmem:[#allocation2 + $0x144] ss:$16 sps:$4 sm:$0xff]   ;;  %v1425_v57 = vld [vmem:[#allocation2 + $0x340] ss:$16 sps:$4 sm:$0xff]   ;;  %v1477_v27 = vld [vmem:[#allocation2 + $0x248] ss:$16 sps:$4 sm:$0xff]  }
  0x38   :  { %891 = vmatprep.subr.bf16.mxu1 %v1386_v29  ;;  %v1422_v55 = vld [vmem:[#allocation2 + $0x344] ss:$16 sps:$4 sm:$0xff]   ;;  %v1430_v60 = vld [vmem:[#allocation2 + $0x120] ss:$16 sps:$4 sm:$0xff]   ;;  %v1482_v28 = vld [vmem:[#allocation2 + $0x2c] ss:$16 sps:$4 sm:$0xff]  }
  0x39   :  { %v1426_v58 = vld [vmem:[#allocation2 + $0x124] ss:$16 sps:$4 sm:$0xff]   ;;  %v1431_v61 = vld [vmem:[#allocation2 + $0x320] ss:$16 sps:$4 sm:$0xff]   ;;  %v1485_v29 = vld [vmem:[#allocation2 + $0x22c] ss:$16 sps:$4 sm:$0xff]  }
  0x3a   :  { %849 = vmatpush1.bf16.msra.mxu0 %v1388_v30  ;;  %v1428_v59 = vld [vmem:[#allocation2 + $0x324] ss:$16 sps:$4 sm:$0xff]   ;;  %v1436_v0 = vld [vmem:[#allocation2 + $0x100] ss:$16 sps:$4 sm:$0xff]   ;;  %v1480_v30 = vld [vmem:[#allocation2 + $0x28] ss:$16 sps:$4 sm:$0xff]  }
  0x3b   :  { %892 = vmatpush1.bf16.msra.mxu1 %v1389_v31  ;;  %850 = vmatprep.subr.bf16.mxu0 %v1390_v32  ;;  %v1432_v62 = vld [vmem:[#allocation2 + $0x104] ss:$16 sps:$4 sm:$0xff]   ;;  %v1437_v1 = vld [vmem:[#allocation2 + $0x300] ss:$16 sps:$4 sm:$0xff]   ;;  %v1483_v31 = vld [vmem:[#allocation2 + $0x228] ss:$16 sps:$4 sm:$0xff]  }
  0x3c   :  { %893 = vmatprep.subr.bf16.mxu1 %v1392_v33  ;;  %v1434_v63 = vld [vmem:[#allocation2 + $0x304] ss:$16 sps:$4 sm:$0xff]   ;;  %v1625_v4 = vld [vmem:[%s1642_s0] ss:$16 sps:$4 sm:$0xff]   ;;  %v1488_v32 = vld [vmem:[#allocation2 + $0xc] ss:$16 sps:$4 sm:$0xff]  }
  0x3d   :  { %v1491_v33 = vld [vmem:[#allocation2 + $0x20c] ss:$16 sps:$4 sm:$0xff]  }
  0x3e   :  { %851 = vmatpush2.bf16.msra.mxu0 %v1394_v34  ;;  %v1486_v34 = vld [vmem:[#allocation2 + $0x8] ss:$16 sps:$4 sm:$0xff]  }
  0x3f   :  { %894 = vmatpush2.bf16.msra.mxu1 %v1395_v35  ;;  %852 = vmatprep.subr.bf16.mxu0 %v1396_v36  ;;  %v1489_v35 = vld [vmem:[#allocation2 + $0x208] ss:$16 sps:$4 sm:$0xff]   ;;  %v1494_v36 = vld [vmem:[#allocation2 + $0x1ec] ss:$16 sps:$4 sm:$0xff]  }
  0x40   :  { %895 = vmatprep.subr.bf16.mxu1 %v1398_v37  ;;  %v1497_v37 = vld [vmem:[#allocation2 + $0x3ec] ss:$16 sps:$4 sm:$0xff]  }
  0x42   :  { %853 = vmatpush2.bf16.msra.mxu0 %v1400_v38  ;;  %v1492_v38 = vld [vmem:[#allocation2 + $0x1e8] ss:$16 sps:$4 sm:$0xff]  }
  0x43   :  { %896 = vmatpush2.bf16.msra.mxu1 %v1401_v39  ;;  %854 = vmatprep.subr.bf16.mxu0 %v1402_v40  ;;  %v1495_v39 = vld [vmem:[#allocation2 + $0x3e8] ss:$16 sps:$4 sm:$0xff]   ;;  %v1500_v40 = vld [vmem:[#allocation2 + $0x1cc] ss:$16 sps:$4 sm:$0xff]  }
  0x44   :  { %897 = vmatprep.subr.bf16.mxu1 %v1404_v41  ;;  %v1503_v41 = vld [vmem:[#allocation2 + $0x3cc] ss:$16 sps:$4 sm:$0xff]  }
  0x46   :  { %855 = vmatpush2.bf16.msra.mxu0 %v1406_v42  ;;  %v1498_v42 = vld [vmem:[#allocation2 + $0x1c8] ss:$16 sps:$4 sm:$0xff]  }
  0x47   :  { %898 = vmatpush2.bf16.msra.mxu1 %v1407_v43  ;;  %856 = vmatprep.subr.bf16.mxu0 %v1408_v44  ;;  %v1501_v43 = vld [vmem:[#allocation2 + $0x3c8] ss:$16 sps:$4 sm:$0xff]   ;;  %v1506_v44 = vld [vmem:[#allocation2 + $0x1ac] ss:$16 sps:$4 sm:$0xff]  }
  0x48   :  { %899 = vmatprep.subr.bf16.mxu1 %v1410_v45  ;;  %v1509_v45 = vld [vmem:[#allocation2 + $0x3ac] ss:$16 sps:$4 sm:$0xff]  }
  0x4a   :  { %857 = vmatpush2.bf16.msra.mxu0 %v1412_v46  ;;  %v1504_v46 = vld [vmem:[#allocation2 + $0x1a8] ss:$16 sps:$4 sm:$0xff]  }
  0x4b   :  { %900 = vmatpush2.bf16.msra.mxu1 %v1413_v47  ;;  %858 = vmatprep.subr.bf16.mxu0 %v1414_v48  ;;  %v1507_v47 = vld [vmem:[#allocation2 + $0x3a8] ss:$16 sps:$4 sm:$0xff]   ;;  %v1512_v48 = vld [vmem:[#allocation2 + $0x18c] ss:$16 sps:$4 sm:$0xff]  }
  0x4c   :  { %901 = vmatprep.subr.bf16.mxu1 %v1416_v50  ;;  %v1510_v50 = vld [vmem:[#allocation2 + $0x188] ss:$16 sps:$4 sm:$0xff]  }
  0x4e   :  { %859 = vmatpush2.bf16.msra.mxu0 %v1418_v52  ;;  %v1518_v52 = vld [vmem:[#allocation2 + $0x16c] ss:$16 sps:$4 sm:$0xff]  }
  0x4f   :  { %902 = vmatpush2.bf16.msra.mxu1 %v1419_v53  ;;  %860 = vmatprep.subr.bf16.mxu0 %v1420_v54  ;;  %v1521_v53 = vld [vmem:[#allocation2 + $0x36c] ss:$16 sps:$4 sm:$0xff]   ;;  %v1516_v54 = vld [vmem:[#allocation2 + $0x168] ss:$16 sps:$4 sm:$0xff]  }
  0x50   :  { %903 = vmatprep.subr.bf16.mxu1 %v1422_v55  ;;  %v1519_v55 = vld [vmem:[#allocation2 + $0x368] ss:$16 sps:$4 sm:$0xff]  }
  0x52   :  { %861 = vmatpush2.bf16.msra.mxu0 %v1424_v56  ;;  %v1524_v56 = vld [vmem:[#allocation2 + $0x14c] ss:$16 sps:$4 sm:$0xff]  }
  0x53   :  { %904 = vmatpush2.bf16.msra.mxu1 %v1425_v57  ;;  %862 = vmatprep.subr.bf16.mxu0 %v1426_v58  ;;  %v1527_v57 = vld [vmem:[#allocation2 + $0x34c] ss:$16 sps:$4 sm:$0xff]   ;;  %v1522_v58 = vld [vmem:[#allocation2 + $0x148] ss:$16 sps:$4 sm:$0xff]  }
  0x54   :  { %905 = vmatprep.subr.bf16.mxu1 %v1428_v59  ;;  %v1525_v59 = vld [vmem:[#allocation2 + $0x348] ss:$16 sps:$4 sm:$0xff]  }
  0x56   :  { %863 = vmatpush2.bf16.msra.mxu0 %v1430_v60  ;;  %v1530_v60 = vld [vmem:[#allocation2 + $0x12c] ss:$16 sps:$4 sm:$0xff]  }
  0x57   :  { %906 = vmatpush2.bf16.msra.mxu1 %v1431_v61  ;;  %864 = vmatprep.subr.bf16.mxu0 %v1432_v62  ;;  %v1533_v61 = vld [vmem:[#allocation2 + $0x32c] ss:$16 sps:$4 sm:$0xff]   ;;  %v1528_v62 = vld [vmem:[#allocation2 + $0x128] ss:$16 sps:$4 sm:$0xff]  }
  0x58   :  { %907 = vmatprep.subr.bf16.mxu1 %v1434_v63  ;;  %v1531_v63 = vld [vmem:[#allocation2 + $0x328] ss:$16 sps:$4 sm:$0xff]  }
  0x5a   :  { %865 = vmatpush2.bf16.msra.mxu0 %v1436_v0  ;;  %v1536_v0 = vld [vmem:[#allocation2 + $0x10c] ss:$16 sps:$4 sm:$0xff]  }
  0x5b   :  { %908 = vmatpush2.bf16.msra.mxu1 %v1437_v1  ;;  %920 = vmatprep.subr.bf16.mxu0 %v1446_v2  ;;  %v1539_v1 = vld [vmem:[#allocation2 + $0x30c] ss:$16 sps:$4 sm:$0xff]   ;;  %v1534_v2 = vld [vmem:[#allocation2 + $0x108] ss:$16 sps:$4 sm:$0xff]  }
  0x5c   :  { %963 = vmatprep.subr.bf16.mxu1 %v1449_v3  ;;  %v1537_v3 = vld [vmem:[#allocation2 + $0x308] ss:$16 sps:$4 sm:$0xff]  }
  0x5d   :  { %867 = vmatmul.mubr.bf16.vlgmr.msra.gmra.mxu0 %v1625_v4 }
  0x5e   :  { %910 = vmatmul.mubr.bf16.vlgmr.msra.gmra.mxu1 %v1630_v5  ;;  %921 = vmatpush1.bf16.msra.mxu0 %v1444_v6  ;;  %v1049_v6 = vld [vmem:[#allocation4 + $0xf8] sm:$0xff] }
  0x5f   :  { %964 = vmatpush1.bf16.msra.mxu1 %v1447_v7  ;;  %922 = vmatprep.subr.bf16.mxu0 %v1452_v8  ;;  %v1033_v7 = vld [vmem:[#allocation4 + $0x78] sm:$0xff]  ;;  %v1048_v8 = vld [vmem:[#allocation4 + $0xf0] sm:$0xff] }
  0x60   :  { %965 = vmatprep.subr.bf16.mxu1 %v1455_v9  ;;  %952 = vmatprep.mubr.bf16.mxu0 %v1440_v49  ;;  %v1515_v49 = vld [vmem:[#allocation2 + $0x38c] ss:$16 sps:$4 sm:$0xff]   ;;  %v1032_v9 = vld [vmem:[#allocation4 + $0x70] sm:$0xff] }
  0x61   :  { %995 = vmatprep.mubr.bf16.mxu1 %v1443_v51  ;;  %v1513_v51 = vld [vmem:[#allocation2 + $0x388] ss:$16 sps:$4 sm:$0xff]  }
  0x62   :  { %923 = vmatpush1.bf16.msra.mxu0 %v1450_v10  ;;  %v1047_v10 = vld [vmem:[#allocation4 + $0xe8] sm:$0xff] }
  0x63   :  { %966 = vmatpush1.bf16.msra.mxu1 %v1453_v11  ;;  %924 = vmatprep.subr.bf16.mxu0 %v1458_v12  ;;  %v1031_v11 = vld [vmem:[#allocation4 + $0x68] sm:$0xff]  ;;  %v1046_v12 = vld [vmem:[#allocation4 + $0xe0] sm:$0xff] }
  0x64   :  { %967 = vmatprep.subr.bf16.mxu1 %v1461_v13  ;;  %v1030_v13 = vld [vmem:[#allocation4 + $0x60] sm:$0xff] }
  0x66   :  { %925 = vmatpush1.bf16.msra.mxu0 %v1456_v14  ;;  %v1044_v14 = vld [vmem:[#allocation4 + $0xd0] sm:$0xff] }
  0x67   :  { %968 = vmatpush1.bf16.msra.mxu1 %v1459_v15  ;;  %926 = vmatprep.subr.bf16.mxu0 %v1464_v16  ;;  %v1028_v15 = vld [vmem:[#allocation4 + $0x50] sm:$0xff]  ;;  %v1043_v16 = vld [vmem:[#allocation4 + $0xc8] sm:$0xff] }
  0x68   :  { %969 = vmatprep.subr.bf16.mxu1 %v1467_v17  ;;  %v1027_v17 = vld [vmem:[#allocation4 + $0x48] sm:$0xff] }
  0x6a   :  { %927 = vmatpush1.bf16.msra.mxu0 %v1462_v18  ;;  %v1042_v18 = vld [vmem:[#allocation4 + $0xc0] sm:$0xff] }
  0x6b   :  { %970 = vmatpush1.bf16.msra.mxu1 %v1465_v19  ;;  %928 = vmatprep.subr.bf16.mxu0 %v1470_v20  ;;  %v1026_v19 = vld [vmem:[#allocation4 + $0x40] sm:$0xff]  ;;  %v1041_v20 = vld [vmem:[#allocation4 + $0xb8] sm:$0xff] }
  0x6c   :  { %971 = vmatprep.subr.bf16.mxu1 %v1473_v21  ;;  %v1025_v21 = vld [vmem:[#allocation4 + $0x38] sm:$0xff] }
  0x6e   :  { %929 = vmatpush1.bf16.msra.mxu0 %v1468_v22  ;;  %v1040_v22 = vld [vmem:[#allocation4 + $0xb0] sm:$0xff] }
  0x6f   :  { %972 = vmatpush1.bf16.msra.mxu1 %v1471_v23  ;;  %930 = vmatprep.subr.bf16.mxu0 %v1476_v24  ;;  %v1024_v23 = vld [vmem:[#allocation4 + $0x30] sm:$0xff]  ;;  %v1039_v24 = vld [vmem:[#allocation4 + $0xa8] sm:$0xff] }
  0x70   :  { %973 = vmatprep.subr.bf16.mxu1 %v1479_v25  ;;  %v1023_v25 = vld [vmem:[#allocation4 + $0x28] sm:$0xff] }
  0x72   :  { %931 = vmatpush1.bf16.msra.mxu0 %v1474_v26  ;;  %v1038_v26 = vld [vmem:[#allocation4 + $0xa0] sm:$0xff] }
  0x73   :  { %974 = vmatpush1.bf16.msra.mxu1 %v1477_v27  ;;  %932 = vmatprep.subr.bf16.mxu0 %v1482_v28  ;;  %v1022_v27 = vld [vmem:[#allocation4 + $0x20] sm:$0xff]  ;;  %v1037_v28 = vld [vmem:[#allocation4 + $0x98] sm:$0xff] }
  0x74   :  { %975 = vmatprep.subr.bf16.mxu1 %v1485_v29  ;;  %v1021_v29 = vld [vmem:[#allocation4 + $0x18] sm:$0xff] }
  0x76   :  { %933 = vmatpush1.bf16.msra.mxu0 %v1480_v30  ;;  %v1036_v30 = vld [vmem:[#allocation4 + $0x90] sm:$0xff] }
  0x77   :  { %976 = vmatpush1.bf16.msra.mxu1 %v1483_v31  ;;  %934 = vmatprep.subr.bf16.mxu0 %v1488_v32  ;;  %v1020_v31 = vld [vmem:[#allocation4 + $0x10] sm:$0xff]  ;;  %v1035_v32 = vld [vmem:[#allocation4 + $0x88] sm:$0xff] }
  0x78   :  { %977 = vmatprep.subr.bf16.mxu1 %v1491_v33  ;;  %v1019_v33 = vld [vmem:[#allocation4 + $0x8] sm:$0xff] }
  0x7a   :  { %935 = vmatpush1.bf16.msra.mxu0 %v1486_v34  ;;  %v1034_v34 = vld [vmem:[#allocation4 + $0x80] sm:$0xff] }
  0x7b   :  { %978 = vmatpush1.bf16.msra.mxu1 %v1489_v35  ;;  %936 = vmatprep.subr.bf16.mxu0 %v1494_v36  ;;  %v1018_v35 = vld [vmem:[#allocation4] sm:$0xff] }
  0x7c   :  { %979 = vmatprep.subr.bf16.mxu1 %v1497_v37 }
  0x7e   :  { %937 = vmatpush2.bf16.msra.mxu0 %v1492_v38 }
  0x7f   :  { %980 = vmatpush2.bf16.msra.mxu1 %v1495_v39  ;;  %938 = vmatprep.subr.bf16.mxu0 %v1500_v40 }
  0x80   :  { %981 = vmatprep.subr.bf16.mxu1 %v1503_v41 }
  0x82   :  { %939 = vmatpush2.bf16.msra.mxu0 %v1498_v42 }
  0x83   :  { %982 = vmatpush2.bf16.msra.mxu1 %v1501_v43  ;;  %940 = vmatprep.subr.bf16.mxu0 %v1506_v44 }
  0x84   :  { %983 = vmatprep.subr.bf16.mxu1 %v1509_v45 }
  0x86   :  { %941 = vmatpush2.bf16.msra.mxu0 %v1504_v46 }
  0x87   :  { %984 = vmatpush2.bf16.msra.mxu1 %v1507_v47  ;;  %942 = vmatprep.subr.bf16.mxu0 %v1512_v48 }
  0x88   :  { %985 = vmatprep.subr.bf16.mxu1 %v1515_v49 }
  0x8a   :  { %943 = vmatpush2.bf16.msra.mxu0 %v1510_v50 }
  0x8b   :  { %986 = vmatpush2.bf16.msra.mxu1 %v1513_v51  ;;  %944 = vmatprep.subr.bf16.mxu0 %v1518_v52 }
  0x8c   :  { %987 = vmatprep.subr.bf16.mxu1 %v1521_v53 }
  0x8e   :  { %945 = vmatpush2.bf16.msra.mxu0 %v1516_v54 }
  0x8f   :  { %988 = vmatpush2.bf16.msra.mxu1 %v1519_v55  ;;  %946 = vmatprep.subr.bf16.mxu0 %v1524_v56 }
  0x90   :  { %989 = vmatprep.subr.bf16.mxu1 %v1527_v57 }
  0x92   :  { %947 = vmatpush2.bf16.msra.mxu0 %v1522_v58 }
  0x93   :  { %990 = vmatpush2.bf16.msra.mxu1 %v1525_v59  ;;  %948 = vmatprep.subr.bf16.mxu0 %v1530_v60 }
  0x94   :  { %991 = vmatprep.subr.bf16.mxu1 %v1533_v61 }
  0x96   :  { %949 = vmatpush2.bf16.msra.mxu0 %v1528_v62 }
  0x97   :  { %992 = vmatpush2.bf16.msra.mxu1 %v1531_v63  ;;  %950 = vmatprep.subr.bf16.mxu0 %v1536_v0 }
  0x98   :  { %993 = vmatprep.subr.bf16.mxu1 %v1539_v1 }
  0x9a   :  { %951 = vmatpush2.bf16.msra.mxu0 %v1534_v2 }
  0x9b   :  { %994 = vmatpush2.bf16.msra.mxu1 %v1537_v3  ;;  %1266 = vmatprep.subr.mxu0 %v1049_v6 }
  0x9c   :  { %1304 = vmatprep.subr.mxu1 %v1049_v6 }
  0x9d   :  { %953 = vmatmul.mubr.bf16.vlgmr.msra.gmra.mxu0 %v1625_v4  ;;  %v1045_v4 = vld [vmem:[#allocation4 + $0xd8] sm:$0xff] }
  0x9e   :  { %996 = vmatmul.mubr.bf16.vlgmr.msra.gmra.mxu1 %v1630_v5  ;;  %1267 = vmatpush3.msra.mxu0 %v1033_v7  ;;  %v1029_v5 = vld [vmem:[#allocation4 + $0x58] sm:$0xff] }
  0x9f   :  { %1320 = vmatpush3.msra.mxu1 %v1033_v7  ;;  %1268 = vmatprep.subr.mxu0 %v1048_v8 }
  0xa0   :  { %1305 = vmatprep.subr.mxu1 %v1048_v8  ;;  %1269 = vmatpush3.msra.mxu0 %v1032_v9 }
  0xa1   :  { %1321 = vmatpush3.msra.mxu1 %v1032_v9  ;;  %1270 = vmatprep.subr.mxu0 %v1047_v10 }
  0xa2   :  { %1306 = vmatprep.subr.mxu1 %v1047_v10  ;;  %1271 = vmatpush3.msra.mxu0 %v1031_v11 }
  0xa3   :  { %1322 = vmatpush3.msra.mxu1 %v1031_v11  ;;  %1272 = vmatprep.subr.mxu0 %v1046_v12 }
  0xa4   :  { %1307 = vmatprep.subr.mxu1 %v1046_v12  ;;  %1273 = vmatpush3.msra.mxu0 %v1030_v13 }
  0xa5   :  { %1323 = vmatpush3.msra.mxu1 %v1030_v13  ;;  %1274 = vmatprep.subr.mxu0 %v1045_v4 }
  0xa6   :  { %1308 = vmatprep.subr.mxu1 %v1045_v4  ;;  %1275 = vmatpush3.msra.mxu0 %v1029_v5 }
  0xa7   :  { %1324 = vmatpush3.msra.mxu1 %v1029_v5  ;;  %1276 = vmatprep.subr.mxu0 %v1044_v14 }
  0xa8   :  { %1309 = vmatprep.subr.mxu1 %v1044_v14  ;;  %1277 = vmatpush3.msra.mxu0 %v1028_v15 }
  0xa9   :  { %1325 = vmatpush3.msra.mxu1 %v1028_v15  ;;  %1278 = vmatprep.subr.mxu0 %v1043_v16 }
  0xaa   :  { %1310 = vmatprep.subr.mxu1 %v1043_v16  ;;  %1279 = vmatpush3.msra.mxu0 %v1027_v17 }
  0xab   :  { %1326 = vmatpush3.msra.mxu1 %v1027_v17  ;;  %1280 = vmatprep.subr.mxu0 %v1042_v18 }
  0xac   :  { %1311 = vmatprep.subr.mxu1 %v1042_v18  ;;  %1281 = vmatpush3.msra.mxu0 %v1026_v19 }
  0xad   :  { %1327 = vmatpush3.msra.mxu1 %v1026_v19  ;;  %1282 = vmatprep.subr.mxu0 %v1041_v20 }
  0xae   :  { %1312 = vmatprep.subr.mxu1 %v1041_v20  ;;  %1283 = vmatpush3.msra.mxu0 %v1025_v21 }
  0xaf   :  { %1328 = vmatpush3.msra.mxu1 %v1025_v21  ;;  %1284 = vmatprep.subr.mxu0 %v1040_v22 }
  0xb0   :  { %1313 = vmatprep.subr.mxu1 %v1040_v22  ;;  %1285 = vmatpush3.msra.mxu0 %v1024_v23 }
  0xb1   :  { %1329 = vmatpush3.msra.mxu1 %v1024_v23  ;;  %1286 = vmatprep.subr.mxu0 %v1039_v24 }
  0xb2   :  { %1314 = vmatprep.subr.mxu1 %v1039_v24  ;;  %1287 = vmatpush3.msra.mxu0 %v1023_v25 }
  0xb3   :  { %1330 = vmatpush3.msra.mxu1 %v1023_v25  ;;  %1288 = vmatprep.subr.mxu0 %v1038_v26 }
  0xb4   :  { %1315 = vmatprep.subr.mxu1 %v1038_v26  ;;  %1289 = vmatpush3.msra.mxu0 %v1022_v27 }
  0xb5   :  { %1331 = vmatpush3.msra.mxu1 %v1022_v27  ;;  %1290 = vmatprep.subr.mxu0 %v1037_v28 }
  0xb6   :  { %1316 = vmatprep.subr.mxu1 %v1037_v28  ;;  %1291 = vmatpush3.msra.mxu0 %v1021_v29 }
  0xb7   :  { %1332 = vmatpush3.msra.mxu1 %v1021_v29  ;;  %1292 = vmatprep.subr.mxu0 %v1036_v30 }
  0xb8   :  { %1317 = vmatprep.subr.mxu1 %v1036_v30  ;;  %1293 = vmatpush3.msra.mxu0 %v1020_v31 }
  0xb9   :  { %1333 = vmatpush3.msra.mxu1 %v1020_v31  ;;  %1294 = vmatprep.subr.mxu0 %v1035_v32 }
  0xba   :  { %1318 = vmatprep.subr.mxu1 %v1035_v32  ;;  %1295 = vmatpush3.msra.mxu0 %v1019_v33 }
  0xbb   :  { %1334 = vmatpush3.msra.mxu1 %v1019_v33  ;;  %1296 = vmatprep.subr.mxu0 %v1034_v34 }
  0xbc   :  { %1319 = vmatprep.subr.mxu1 %v1034_v34  ;;  %1297 = vmatpush3.msra.mxu0 %v1018_v35 }
  0xbd   :  { %1335 = vmatpush3.msra.mxu1 %v1018_v35 }
 0x11d   :  { %v868_v36 = vpop.f32.mrf.mxu0 }
 0x11e   :  { %v911_v37 = vpop.f32.mrf.mxu1 }
 0x11f   :  { %v870_v38 = vpop.f32.mrf.mxu0  ;;  %v912_v48 = vadd.f32 %v911_v37, %v868_v36 }
 0x120   :  { %v913_v39 = vpop.f32.mrf.mxu1 }
 0x121   :  { %v872_v40 = vpop.f32.mrf.mxu0  ;;  %v914_v46 = vadd.f32 %v913_v39, %v870_v38  ;;  %v1006_v59 = vmul.f32 %v912_v48, %v912_v48 }
 0x122   :  { %v915_v41 = vpop.f32.mrf.mxu1 }
 0x123   :  { %v874_v42 = vpop.f32.mrf.mxu0  ;;  %v1007_v55 = vmul.f32 %v914_v46, %v914_v46  ;;  %v916_v60 = vadd.f32 %v915_v41, %v872_v40 }
 0x124   :  { %v917_v43 = vpop.f32.mrf.mxu1 }
 0x125   :  { %v918_v56 = vadd.f32 %v917_v43, %v874_v42  ;;  %v1008_v7 = vmul.f32 %v916_v60, %v916_v60 }
 0x127   :  { %v1009_v3 = vmul.f32 %v918_v56, %v918_v56 }
 0x15d   :  { %v954_v44 = vpop.f32.mrf.mxu0 }
 0x15e   :  { %v997_v45 = vpop.f32.mrf.mxu1 }
 0x15f   :  { %v998_v47 = vadd.f32 %v997_v45, %v954_v44  ;;  %v956_v49 = vpop.f32.mrf.mxu0 }
 0x160   :  { %v999_v50 = vpop.f32.mrf.mxu1 }
 0x161   :  { %v1000_v51 = vadd.f32 %v999_v50, %v956_v49  ;;  %v1010_v52 = vmul.f32 %v998_v47, %v998_v47  ;;  %v958_v53 = vpop.f32.mrf.mxu0 }
 0x162   :  { %v1001_v54 = vpop.f32.mrf.mxu1 }
 0x163   :  { %v1011_v57 = vmul.f32 %v1000_v51, %v1000_v51  ;;  %v1002_v58 = vadd.f32 %v1001_v54, %v958_v53  ;;  %v960_v61 = vpop.f32.mrf.mxu0  ;;  %v1014_v1 = vadd.f32 %v1010_v52, %v1006_v59 }
 0x164   :  { %v1003_v62 = vpop.f32.mrf.mxu1 }
 0x165   :  { %v1015_v63 = vadd.f32 %v1011_v57, %v1007_v55  ;;  %v1004_v0 = vadd.f32 %v1003_v62, %v960_v61  ;;  %v1012_v2 = vmul.f32 %v1002_v58, %v1002_v58 }
 0x167   :  { %v1013_v6 = vmul.f32 %v1004_v0, %v1004_v0  ;;  %1114 = vmatprep.mubr.f32.mxu0 %v1015_v63  ;;  %v1016_v9 = vadd.f32 %v1012_v2, %v1008_v7 }
 0x168   :  { %1115 = vmatmul.mubr.f32.vlgmr.msra.gmra.mxu0 %v1014_v1 }
 0x169   :  { %v1017_v8 = vadd.f32 %v1013_v6, %v1009_v3 }
 0x16b   :  { %1119 = vmatprep.mubr.f32.mxu1 %v1017_v8 }
 0x16c   :  { %1120 = vmatmul.mubr.f32.vlgmr.msra.gmra.mxu1 %v1016_v9 }
 0x228   :  { %v1298_v10 = vpop.f32.mrf.mxu0 }
 0x22a   :  { %v1299_v11 = vpop.f32.mrf.mxu0 }
 0x22b   :  { %v1300_v12 = vadd.f32 %v1299_v11, %v1298_v10 }
 0x22c   :  { %v1301_v13 = vpop.f32.mrf.mxu1 }
 0x22d   :  { %1126 = vst.msk [vmem:[%s1645_s3] sm:$0xff] %vm1125_vm0, %v1300_v12 }
 0x22e   :  { %v1302_v4 = vpop.f32.mrf.mxu1 }
 0x22f   :  { %v1303_v5 = vadd.f32 %v1302_v4, %v1301_v13 }
 0x231   :  { %1127 = vst.msk [vmem:[%s1645_s3 + $0x8] sm:$0xff] %vm1125_vm0, %v1303_v5 }
 0x232   :  { %1132 = vsyncpa [#allocation3], 1 }
 0x233   :  { %1133 = vsyncpa [#allocation5], 1 }

</bundles_post_ra>
